<compile_context>
chip_gen: v7x
topology: tpu7x:2x2x1
jax: 0.10.0
libtpu: 0.0.40
codegen_flags: <defaults>
</compile_context>

<pallas_src>
import jax
import jax.numpy as jnp
from jax.experimental import pallas as pl
from jax.experimental.pallas import tpu as pltpu


def lr_kernel(fv_ref, bias_ref, w_ref, o_ref):
    """Fused per-row-bias add + linear + sigmoid over one batch tile.

    fv_ref  : [TB, 2+F] f32  raw feature rows (cols 0,1 = ids, cols 2: = x)
    bias_ref: [TB, 1]   f32  user_emb[uid] + item_emb[iid] + linear bias
    w_ref   : [1, 2+F]  f32  Linear weight, zero-padded over the two id columns
    o_ref   : [TB, 1]   f32  sigmoid output
    """
    fv = fv_ref[...]                                   # [TB, 2+F]
    w = w_ref[...]                                     # [1, 2+F]
    # Linear(F, 1) on the VPU + one XLU lane-reduce; id columns hit zero weights.
    lin = jnp.sum(fv * w, axis=-1, keepdims=True)      # [TB, 1]
    z = lin + bias_ref[...]                            # [TB, 1]
    # sigmoid via EUP: exp + approximate reciprocal (no VALU divide).
    o_ref[...] = pl.reciprocal(1.0 + jnp.exp(-z), approx=True)


def logistic_regression_forward(feature_vector, user_table, item_table, w, b,
                                *, block_b=1024):
    """feature_vector: [B, 2+F] f32. Returns sigmoid scores [B, 1] f32."""
    fv = feature_vector.astype(jnp.float32)
    B, C = fv.shape                                    # C = 2 + F

    # O(B) embedding gather (embedding dim is 1) — plain XLA gather; the
    # scalar linear bias is folded into the same per-row bias vector.
    # NOTE: ids ride in a float tensor and are cast, exactly like torch .long();
    # ids >= 2**24 are not exactly representable (inherited from the module).
    uid = fv[:, 0].astype(jnp.int32)
    iid = fv[:, 1].astype(jnp.int32)
    row_bias = (user_table[uid, 0] + item_table[iid, 0]
                + jnp.asarray(b, jnp.float32).reshape(())).reshape(B, 1)
    row_bias = row_bias.astype(jnp.float32)

    # Zero-pad the Linear weight over the two id columns so the kernel can
    # consume feature rows unsliced (0 * id == 0 exactly).
    w_pad = jnp.concatenate(
        [jnp.zeros((1, 2), jnp.float32), w.astype(jnp.float32)], axis=1)  # [1, C]

    # Batch tiling: TB rows per grid step, padded so the grid divides evenly.
    tb = block_b if B >= block_b else max(8, ((B + 7) // 8) * 8)
    nb = pl.cdiv(B, tb)
    b_pad = nb * tb
    if b_pad != B:
        fv = jnp.pad(fv, ((0, b_pad - B), (0, 0)))
        row_bias = jnp.pad(row_bias, ((0, b_pad - B), (0, 0)))

    out = pl.pallas_call(
        lr_kernel,
        out_shape=jax.ShapeDtypeStruct((b_pad, 1), jnp.float32),
        grid=(nb,),
        in_specs=[
            pl.BlockSpec((tb, C), lambda i: (i, 0)),   # feature rows
            pl.BlockSpec((tb, 1), lambda i: (i, 0)),   # per-row bias
            pl.BlockSpec((1, C), lambda i: (0, 0)),    # weight (grid-resident)
        ],
        out_specs=pl.BlockSpec((tb, 1), lambda i: (i, 0)),
        compiler_params=pltpu.CompilerParams(
            dimension_semantics=("parallel",)),
    )(fv, row_bias, w_pad)
    return out[:B]


if __name__ == "__main__":
    num_users, num_items, num_feature = 16, 16, 32
    batch = 8

    key = jax.random.PRNGKey(0)
    k_u, k_i, k_w, k_b, k_f, k_uid, k_iid = jax.random.split(key, 7)

    # Deterministic parameter init (xavier_normal_-style gaussians for the
    # embeddings, small uniform for the Linear, as in torch defaults).
    user_table = jax.random.normal(k_u, (num_users, 1), jnp.float32) * 0.5
    item_table = jax.random.normal(k_i, (num_items, 1), jnp.float32) * 0.5
    bound = 1.0 / jnp.sqrt(num_feature)
    w = jax.random.uniform(k_w, (1, num_feature), jnp.float32, -bound, bound)
    b = jax.random.uniform(k_b, (1,), jnp.float32, -bound, bound)

    # Build feature_vector [B, 2 + F]: ids stored as floats (cast inside).
    uid = jax.random.randint(k_uid, (batch, 1), 0, num_users).astype(jnp.float32)
    iid = jax.random.randint(k_iid, (batch, 1), 0, num_items).astype(jnp.float32)
    feats = jax.random.normal(k_f, (batch, num_feature), jnp.float32)
    feature_vector = jnp.concatenate([uid, iid, feats], axis=1)

    out = logistic_regression_forward(feature_vector, user_table, item_table, w, b)
    out = jax.block_until_ready(out)

    # Pure-JAX reference for sanity (tolerance loosened for approx reciprocal).
    ref = jax.nn.sigmoid(
        user_table[uid.astype(jnp.int32)[:, 0]]
        + item_table[iid.astype(jnp.int32)[:, 0]]
        + feats @ w.T
        + b
    )
    assert out.shape == (batch, 1)
    assert jnp.allclose(out, ref, atol=5e-3), "mismatch vs reference"

    print("KERNEL_OK")
</pallas_src>

<mosaic_0001>
module attributes {stable_mosaic.version = 11 : i64} {
  func.func @lr_kernel(%arg0: i32, %arg1: memref<8x34xf32, #tpu.memory_space<vmem>>, %arg2: memref<8x1xf32, #tpu.memory_space<vmem>>, %arg3: memref<1x34xf32, #tpu.memory_space<vmem>>, %arg4: memref<8x1xf32, #tpu.memory_space<vmem>>) attributes {dimension_semantics = [#tpu.dimension_semantics<parallel>], iteration_bounds = array<i64: 1>, scalar_prefetch = 0 : i64, scratch_operands = 0 : i64, tpu.core_type = #tpu.core_type<tc>, window_params = [{transform_indices = @transform_0, window_bounds = array<i64: 8, 34>}, {transform_indices = @transform_1, window_bounds = array<i64: 8, 1>}, {pipeline_mode = #tpu.pipeline_mode<synchronous>, transform_indices = @transform_2, window_bounds = array<i64: 1, 34>}, {transform_indices = @transform_3, window_bounds = array<i64: 8, 1>}]} {
    %c0 = arith.constant 0 : index
    %c0_0 = arith.constant 0 : index
    %0 = vector.load %arg1[%c0, %c0_0] : memref<8x34xf32, #tpu.memory_space<vmem>>, vector<8x34xf32>
    %c0_1 = arith.constant 0 : index
    %c0_2 = arith.constant 0 : index
    %1 = vector.load %arg3[%c0_1, %c0_2] : memref<1x34xf32, #tpu.memory_space<vmem>>, vector<1x34xf32>
    %2 = vector.broadcast %1 : vector<1x34xf32> to vector<8x34xf32>
    %3 = arith.mulf %0, %2 : vector<8x34xf32>
    %cst = arith.constant dense<0.000000e+00> : vector<8xf32>
    %4 = vector.multi_reduction <add>, %3, %cst [1] : vector<8x34xf32> to vector<8xf32>
    %5 = vector.shape_cast %4 : vector<8xf32> to vector<8x1xf32>
    %c0_3 = arith.constant 0 : index
    %c0_4 = arith.constant 0 : index
    %6 = vector.load %arg2[%c0_3, %c0_4] : memref<8x1xf32, #tpu.memory_space<vmem>>, vector<8x1xf32>
    %7 = arith.addf %5, %6 : vector<8x1xf32>
    %cst_5 = arith.constant 0.000000e+00 : f32
    %8 = vector.broadcast %cst_5 : f32 to vector<8x1xf32>
    %9 = arith.subf %8, %7 : vector<8x1xf32>
    %10 = math.exp %9 : vector<8x1xf32>
    %cst_6 = arith.constant 1.000000e+00 : f32
    %11 = vector.broadcast %cst_6 : f32 to vector<8x1xf32>
    %12 = arith.addf %11, %10 : vector<8x1xf32>
    %13 = tpu.reciprocal %12 {approx = true} : vector<8x1xf32> -> vector<8x1xf32>
    %c0_7 = arith.constant 0 : index
    %c0_8 = arith.constant 0 : index
    %14 = vector.load %arg4[%c0_7, %c0_8] : memref<8x1xf32, #tpu.memory_space<vmem>>, vector<8x1xf32>
    tpu.vector_store %arg4[%c0_7, %c0_8], %13 {strides = array<i32>} : memref<8x1xf32, #tpu.memory_space<vmem>>, vector<8x1xf32>,
    return
  }
  func.func @transform_0(%arg0: i32) -> (i32, i32) {
    %c0_i32 = arith.constant 0 : i32
    %c0_i32_0 = arith.constant 0 : i32
    return %arg0, %c0_i32 : i32, i32
  }
  func.func @transform_1(%arg0: i32) -> (i32, i32) {
    %c0_i32 = arith.constant 0 : i32
    %c0_i32_0 = arith.constant 0 : i32
    return %arg0, %c0_i32 : i32, i32
  }
  func.func @transform_2(%arg0: i32) -> (i32, i32) {
    %c0_i32 = arith.constant 0 : i32
    %c0_i32_0 = arith.constant 0 : i32
    %c0_i32_1 = arith.constant 0 : i32
    return %c0_i32, %c0_i32_0 : i32, i32
  }
  func.func @transform_3(%arg0: i32) -> (i32, i32) {
    %c0_i32 = arith.constant 0 : i32
    %c0_i32_0 = arith.constant 0 : i32
    return %arg0, %c0_i32 : i32, i32
  }
}

</mosaic_0001>

<bundles_post_ra>
// kernel: tpu_custom_call.1
= control target key start
LH: loop header
LB: loop body
LE: loop exit
PB: predicated region body
PF: predicated region fallthrough
CT: control target
= control target key end

     0   :  { %vm23_vm0 = vcmask 277504   ;;  %vm34_vm1 = vcmask 7168   ;;  %s77_s0 = inlined_call_operand.vmem [shape: f32[8,34], index: 0, kind: input, shape index: {}]   ;;  %s78_s2 = inlined_call_operand.vmem [shape: f32[1,34], index: 2, kind: input, shape index: {}]   ;;  %s79_s1 = inlined_call_operand.vmem [shape: f32[8,1], index: 1, kind: input, shape index: {}]   ;;  %s80_s3 = inlined_call_operand.vmem [shape: f32[8,1], index: 3, kind: output, shape index: {}]  }
   0x1   :  { %v14_v0 = vld [vmem:[%s77_s0] sm:$0xff] }
   0x2   :  { %v40_v1 = vld [vmem:[%s78_s2] ss:$0 sm:$0xff] }
   0x3   :  { %v22_v2 = vmul.f32 %v40_v1, %v14_v0  ;;  %v27_v4 = vld [vmem:[%s79_s1] sm:$0xff] }
   0x5   :  { %v24_v3 = vsel %vm23_vm0, %v22_v2, 0.0 }
   0x6   :  { %25 = vadd.xlane.f32.xlu0 %v24_v3 }
  0x93   :  { %v26_v5 = vpop.xlane.xlu0 %25 }
  0x94   :  { %v28_v6 = vadd.f32 %v27_v4, %v26_v5 }
  0x96   :  { %v29_v7 = vsub.f32 0.0, %v28_v6 }
  0x98   :  { %v30_v8 = vmul.f32 1.442695, %v29_v7 }
  0x9a   :  { %41 = vpow2.f32 %v30_v8 }
  0xa4   :  { %v42_v9 = vpop.eup %41 }
  0xa5   :  { %v32_v10 = vadd.f32 1.0, %v42_v9 }
  0xa7   :  { %43 = vrcp.f32 %v32_v10 }
  0xb1   :  { %v44_v11 = vpop.eup %43 }
  0xb2   :  { %35 = vst.msk [vmem:[%s80_s3] sm:$0xff] %vm34_vm1, %v44_v11 }

</bundles_post_ra>
